<compile_context>
chip_gen: v7x
topology: tpu7x:2x2x1
jax: 0.10.0
libtpu: 0.0.40
codegen_flags: <defaults>
</compile_context>

<pallas_src>
import functools

import jax
import jax.numpy as jnp
from jax import lax
from jax.experimental import pallas as pl
from jax.experimental.pallas import tpu as pltpu


# ---------------------------------------------------------------------------
# VMEM budgeting (per TPU generation)
# ---------------------------------------------------------------------------

def _vmem_limit_bytes():
    """Scoped-VMEM budget: ~3/4 of physical, capped at 96 MiB.
    v5e/v6e (128 MiB physical) -> 96 MiB; v7x (64 MiB per TC) -> 48 MiB."""
    cap = 64 * 1024 * 1024                       # conservative fallback (v7x per-TC)
    try:
        cap = pltpu.get_tpu_info().vmem_capacity_bytes
    except Exception:
        pass
    return int(min(96 * 1024 * 1024, cap * 3 // 4))


# ---------------------------------------------------------------------------
# Scaled dot-product attention kernels
# ---------------------------------------------------------------------------

def _flash_sdpa_kernel(q_ref, kT_ref, v_ref, o_ref, qs_ref, m_ref, l_ref, acc_ref,
                       *, scale, mxu_dtype):
    """One (batch*head, q-tile, k-tile) flash-attention step with online softmax.

    q_ref : (tq, D)  f32 (resident across the k axis)
    kT_ref: (D, tk)  mxu_dtype (K pre-transposed in the wrapper -> no per-step XLU transpose)
    v_ref : (tk, Dv) mxu_dtype
    o_ref : (tq, Dv) input dtype
    qs_ref: (tq, D)  mxu_dtype scratch (scale + MXU downcast hoisted out of the k loop)
    m/l/acc: f32 scratch carried across the k (reduction) grid axis.
    """
    ki = pl.program_id(2)

    @pl.when(ki == 0)
    def _():
        q = q_ref[...]
        if scale:                                # mirrors torch `if scale:` (static Python float)
            q = q * scale                        # scale in f32 *before* the MXU downcast
        qs_ref[...] = q.astype(mxu_dtype)
        m_ref[...] = jnp.full(m_ref.shape, -jnp.inf, m_ref.dtype)
        l_ref[...] = jnp.zeros(l_ref.shape, l_ref.dtype)
        acc_ref[...] = jnp.zeros(acc_ref.shape, acc_ref.dtype)

    # scores (tq, tk): bf16 (or f32) operands, f32 accumulation on the MXU.
    s = lax.dot_general(qs_ref[...], kT_ref[...],
                        dimension_numbers=(((1,), (0,)), ((), ())),
                        preferred_element_type=jnp.float32)

    m_prev = m_ref[...]
    m_new = jnp.maximum(m_prev, jnp.max(s, axis=-1, keepdims=True))
    alpha = jnp.exp(m_prev - m_new)
    p = jnp.exp(s - m_new)                       # softmax statistics stay in f32
    l_ref[...] = alpha * l_ref[...] + jnp.sum(p, axis=-1, keepdims=True)
    acc_ref[...] = alpha * acc_ref[...] + lax.dot_general(
        p.astype(mxu_dtype), v_ref[...],
        dimension_numbers=(((1,), (0,)), ((), ())),
        preferred_element_type=jnp.float32)
    m_ref[...] = m_new

    @pl.when(ki == pl.num_programs(2) - 1)
    def _():
        inv_l = 1.0 / l_ref[...]                 # exact divide (approx rcp broke parity)
        o_ref[...] = (acc_ref[...] * inv_l).astype(o_ref.dtype)


def _small_sdpa_kernel(q_ref, k_ref, v_ref, o_ref, *, scale, mxu_dtype):
    """Whole-problem-in-one-grid-step path for tiny shapes (removes per-step overhead)."""
    q = q_ref[...]
    if scale:
        q = q * scale
    s = jnp.einsum("bqd,bkd->bqk", q.astype(mxu_dtype), k_ref[...].astype(mxu_dtype),
                   preferred_element_type=jnp.float32)
    m = jnp.max(s, axis=-1, keepdims=True)
    p = jnp.exp(s - m)
    inv = 1.0 / jnp.sum(p, axis=-1, keepdims=True)        # exact softmax normalization
    ctx = jnp.einsum("bqk,bkd->bqd", p.astype(mxu_dtype), v_ref[...].astype(mxu_dtype),
                     preferred_element_type=jnp.float32)
    o_ref[...] = (ctx * inv).astype(o_ref.dtype)


def _pick_tile(length, block, align):
    """Largest tile <= block that is a multiple of `align` and divides `length`.
    Falls back to the full length (always a legal block shape)."""
    if length <= block or length % align != 0:
        # TODO(synk): pad-and-mask awkward lengths instead of one full-length block
        # (a non-factorable long Lk otherwise forces a VMEM-heavy single tile).
        return length
    block = max(align, (block // align) * align)
    for t in range(block, align - 1, -align):
        if length % t == 0:
            return t
    return length


def scaled_dot_product_attention(Q, K, V, scale=None, *, block_q=512, block_k=512,
                                 mxu_dtype=jnp.bfloat16):
    """Pallas Scaled_Dot_Product_Attention.forward.

    Q: [B, Lq, D], K: [B, Lk, D], V: [B, Lk, Dv] -> context: [B, Lq, Dv]

    mxu_dtype : dtype fed to the MXU matmuls (softmax statistics / accumulators stay f32).
        bf16 (default) hits the bf16-native MXU peak on v5e/v6e/v7x and halves the K/V HBM
        re-stream traffic; pass jnp.float32 for bit-closer parity with the torch f32 module.
    block_q/block_k : flash tile sizes.  block_q=512 halves/quarters K/V re-streaming vs
        256/128 and the working set still fits every generation's scoped-VMEM budget.
    """
    B, Lq, D = Q.shape
    Bk, Lk, Dk = K.shape
    Bv, Lv, Dv = V.shape
    assert Bk == B and Bv == B and Dk == D and Lv == Lk

    # ---- tiny-problem path: one fused grid step over the whole batch ------------------
    total_f32_bytes = 4 * B * (Lq * Lk + Lq * (D + Dv) + Lk * (D + Dv))
    if Lq <= min(block_q, 512) and Lk <= min(block_k, 512) and total_f32_bytes <= (2 << 20):
        kernel = functools.partial(_small_sdpa_kernel, scale=scale, mxu_dtype=mxu_dtype)
        return pl.pallas_call(
            kernel,
            out_shape=jax.ShapeDtypeStruct((B, Lq, Dv), Q.dtype),
            grid_spec=pltpu.PrefetchScalarGridSpec(
                num_scalar_prefetch=0,
                grid=(1,),
                in_specs=[
                    pl.BlockSpec((B, Lq, D), lambda i: (0, 0, 0)),
                    pl.BlockSpec((B, Lk, D), lambda i: (0, 0, 0)),
                    pl.BlockSpec((B, Lk, Dv), lambda i: (0, 0, 0)),
                ],
                out_specs=pl.BlockSpec((B, Lq, Dv), lambda i: (0, 0, 0)),
            ),
            compiler_params=pltpu.CompilerParams(
                dimension_semantics=("arbitrary",)),
        )(Q, K, V)

    # ---- flash path: grid = (batch*head, q tiles, k tiles), online softmax ------------
    tq = _pick_tile(Lq, block_q, 8)       # sublane axis of q/acc/out tiles
    tk = _pick_tile(Lk, block_k, 128)     # lane axis of the (tq, tk) score tile: keep 128-dense

    # K pre-transposed once in XLA so the kernel's RHS is consumed directly by the MXU
    # (no per-k-step XLU transpose).  Casting K/V to the MXU dtype here also halves the
    # HBM traffic that is re-streamed once per q-tile.
    KT = jnp.swapaxes(K, 1, 2).astype(mxu_dtype)          # (B, D, Lk)
    Vc = V.astype(mxu_dtype)

    # v7x megacore: shard the grid on the batch*head axis so the two TCs never re-stream
    # the same K/V for different q-tiles of one head; single-TC chips are unaffected.
    if B >= 2:
        dims = ("parallel", "arbitrary", "arbitrary")
    else:
        dims = ("parallel", "parallel", "arbitrary")

    kernel = functools.partial(_flash_sdpa_kernel, scale=scale, mxu_dtype=mxu_dtype)
    return pl.pallas_call(
        kernel,
        out_shape=jax.ShapeDtypeStruct((B, Lq, Dv), Q.dtype),
        grid_spec=pltpu.PrefetchScalarGridSpec(
            num_scalar_prefetch=0,
            grid=(B, Lq // tq, Lk // tk),
            in_specs=[
                # Batch dim squeezed (None) -> clean 2-D tiles for the MXU.
                pl.BlockSpec((None, tq, D), lambda b, qi, ki: (b, qi, 0)),
                pl.BlockSpec((None, D, tk), lambda b, qi, ki: (b, 0, ki)),
                # If the K/V DMA is still exposed at small tk, sweep pl.Buffered(3) here.
                pl.BlockSpec((None, tk, Dv), lambda b, qi, ki: (b, ki, 0)),
            ],
            # NOTE: Dv < 128 (small head dim) leaves masked lanes on the accumulator update
            # and a masked vst on this output store; packing several heads into the lane
            # axis would fix it but changes this module's (quirky) .view head-split layout.
            out_specs=pl.BlockSpec((None, tq, Dv), lambda b, qi, ki: (b, qi, 0)),
            scratch_shapes=[
                pltpu.VMEM((tq, D), mxu_dtype),      # scaled+cast q (hoisted out of k loop)
                pltpu.VMEM((tq, 1), jnp.float32),    # running max m
                pltpu.VMEM((tq, 1), jnp.float32),    # running denom l
                pltpu.VMEM((tq, Dv), jnp.float32),   # running accumulator
            ],
        ),
        compiler_params=pltpu.CompilerParams(
            dimension_semantics=dims,
            vmem_limit_bytes=_vmem_limit_bytes()),
    )(Q, KT, Vc)


# ---------------------------------------------------------------------------
# Fused epilogue: fc(context) + bias + residual + LayerNorm  (dropout p=0 -> identity)
# ---------------------------------------------------------------------------

def _out_proj_residual_ln_kernel(ctx_ref, x_ref, w_ref, b_ref, g_ref, beta_ref, o_ref,
                                 *, eps, mxu_dtype):
    y = lax.dot_general(ctx_ref[...].astype(mxu_dtype), w_ref[...],
                        dimension_numbers=(((1,), (0,)), ((), ())),
                        preferred_element_type=jnp.float32)
    y = y + b_ref[...] + x_ref[...].astype(jnp.float32)          # bias + residual
    mean = jnp.mean(y, axis=-1, keepdims=True)
    d = y - mean
    var = jnp.mean(d * d, axis=-1, keepdims=True)
    y = d * lax.rsqrt(var + eps)
    o_ref[...] = (y * g_ref[...] + beta_ref[...]).astype(o_ref.dtype)


def _fused_output_block(ctx, x, w_t, b, gamma, beta, *, eps=1e-5, block_rows=256,
                        mxu_dtype=jnp.bfloat16):
    B, L, Din = ctx.shape
    Dm = x.shape[-1]
    N = B * L
    ctx2 = ctx.reshape(N, Din)
    x2 = x.reshape(N, Dm)
    tn = _pick_tile(N, block_rows, 8)
    kernel = functools.partial(_out_proj_residual_ln_kernel, eps=eps, mxu_dtype=mxu_dtype)
    out = pl.pallas_call(
        kernel,
        out_shape=jax.ShapeDtypeStruct((N, Dm), x.dtype),
        grid_spec=pltpu.PrefetchScalarGridSpec(
            num_scalar_prefetch=0,
            grid=(N // tn,),
            in_specs=[
                pl.BlockSpec((tn, Din), lambda i: (i, 0)),
                pl.BlockSpec((tn, Dm), lambda i: (i, 0)),
                # Whole weight resident; constant index -> DMA'd once.  The wrapper-side cast
                # to the MXU dtype halves its VMEM/HBM footprint (pl.Buffered(1) on these
                # constant-index specs is the next knob if VMEM gets tight on v5e/v7x).
                pl.BlockSpec((Din, Dm), lambda i: (0, 0)),
                pl.BlockSpec((1, Dm), lambda i: (0, 0)),
                pl.BlockSpec((1, Dm), lambda i: (0, 0)),
                pl.BlockSpec((1, Dm), lambda i: (0, 0)),
            ],
            out_specs=pl.BlockSpec((tn, Dm), lambda i: (i, 0)),
        ),
        compiler_params=pltpu.CompilerParams(
            dimension_semantics=("parallel",),
            vmem_limit_bytes=_vmem_limit_bytes()),
    )(ctx2, x2, w_t.astype(mxu_dtype),
      b.reshape(1, Dm).astype(jnp.float32),
      gamma.reshape(1, Dm).astype(jnp.float32),
      beta.reshape(1, Dm).astype(jnp.float32))
    return out.reshape(B, L, Dm)


# ---------------------------------------------------------------------------
# Multi_Head_Attention forward
# ---------------------------------------------------------------------------

def init_mha_params(key, dim_model, dtype=jnp.float32):
    ks = jax.random.split(key, 8)
    bound = dim_model ** -0.5

    def unif(k, shape):
        return jax.random.uniform(k, shape, dtype, -bound, bound)

    return {
        # weights stored already transposed vs torch.nn.Linear (shape (in, out))
        "wq_t": unif(ks[0], (dim_model, dim_model)), "bq": unif(ks[1], (dim_model,)),
        "wk_t": unif(ks[2], (dim_model, dim_model)), "bk": unif(ks[3], (dim_model,)),
        "wv_t": unif(ks[4], (dim_model, dim_model)), "bv": unif(ks[5], (dim_model,)),
        "wo_t": unif(ks[6], (dim_model, dim_model)), "bo": unif(ks[7], (dim_model,)),
        "gamma": jnp.ones((dim_model,), dtype), "beta": jnp.zeros((dim_model,), dtype),
    }


def multi_head_attention(x, params, num_head, *, block_q=512, block_k=512,
                         mxu_dtype=jnp.bfloat16):
    """Pallas-backed Multi_Head_Attention.forward (inference; Dropout(p=0.0) = identity)."""
    B, L, Dm = x.shape
    assert Dm % num_head == 0
    Dh = Dm // num_head

    # Q/K/V input projections: dense GEMMs left to XLA (already MXU-optimal).
    Q = jnp.einsum("bld,de->ble", x, params["wq_t"]) + params["bq"]
    K = jnp.einsum("bld,de->ble", x, params["wk_t"]) + params["bk"]
    V = jnp.einsum("bld,de->ble", x, params["wv_t"]) + params["bv"]

    # Same row-major split as torch .view(batch_size * num_head, -1, dim_head).
    Qh = Q.reshape(B * num_head, -1, Dh)
    Kh = K.reshape(B * num_head, -1, Dh)
    Vh = V.reshape(B * num_head, -1, Dh)

    scale = Dh ** (-0.5)
    context = scaled_dot_product_attention(Qh, Kh, Vh, scale,
                                           block_q=block_q, block_k=block_k,
                                           mxu_dtype=mxu_dtype)
    context = context.reshape(B, -1, num_head * Dh)

    # fc -> dropout(identity) -> + x -> LayerNorm, fused into one Pallas kernel.
    return _fused_output_block(context, x, params["wo_t"], params["bo"],
                               params["gamma"], params["beta"], mxu_dtype=mxu_dtype)


# ---------------------------------------------------------------------------
# Pure-JAX references
# ---------------------------------------------------------------------------

def _sdpa_reference(Q, K, V, scale=None):
    s = jnp.einsum("bqd,bkd->bqk", Q, K)
    if scale:
        s = s * scale
    attn = jax.nn.softmax(s, axis=-1)
    return jnp.einsum("bqk,bkd->bqd", attn, V)


def _mha_reference(x, params, num_head, eps=1e-5):
    B, L, Dm = x.shape
    Dh = Dm // num_head
    Q = jnp.einsum("bld,de->ble", x, params["wq_t"]) + params["bq"]
    K = jnp.einsum("bld,de->ble", x, params["wk_t"]) + params["bk"]
    V = jnp.einsum("bld,de->ble", x, params["wv_t"]) + params["bv"]
    Qh = Q.reshape(B * num_head, -1, Dh)
    Kh = K.reshape(B * num_head, -1, Dh)
    Vh = V.reshape(B * num_head, -1, Dh)
    ctx = _sdpa_reference(Qh, Kh, Vh, Dh ** (-0.5)).reshape(B, -1, num_head * Dh)
    out = jnp.einsum("bld,de->ble", ctx, params["wo_t"]) + params["bo"] + x
    mean = jnp.mean(out, axis=-1, keepdims=True)
    var = jnp.mean((out - mean) ** 2, axis=-1, keepdims=True)
    return (out - mean) / jnp.sqrt(var + eps) * params["gamma"] + params["beta"]


if __name__ == "__main__":
    key = jax.random.PRNGKey(0)
    k_x, k_p, k_q, k_k, k_v = jax.random.split(key, 5)

    # --- full Multi_Head_Attention forward: batch=2, seq=8, dim_model=32, num_head=4 ---
    B, L, Dm, H = 2, 8, 32, 4
    x = jax.random.normal(k_x, (B, L, Dm), dtype=jnp.float32)
    params = init_mha_params(k_p, Dm)

    ref = _mha_reference(x, params, H)
    out = multi_head_attention(x, params, H)          # default: bf16 MXU operands
    jax.block_until_ready(out)
    assert out.shape == (B, L, Dm)
    # bf16 matmul operands (f32 accumulation) -> ~1e-2 rounding vs the pure-f32 reference.
    assert jnp.allclose(out, ref, atol=5e-2, rtol=5e-2), "MHA (bf16 MXU) mismatch vs reference"

    # --- tiled flash-attention path (forces Lq/Lk tiling) ------------------------------
    Bf, Lf, Df = 4, 256, 64
    Qf = jax.random.normal(k_q, (Bf, Lf, Df), dtype=jnp.float32)
    Kf = jax.random.normal(k_k, (Bf, Lf, Df), dtype=jnp.float32)
    Vf = jax.random.normal(k_v, (Bf, Lf, Df), dtype=jnp.float32)
    sc = Df ** (-0.5)
    rf = _sdpa_reference(Qf, Kf, Vf, sc)

    # exact-math mode: tight parity check on the online-softmax / tiling plumbing.
    of32 = scaled_dot_product_attention(Qf, Kf, Vf, sc, block_q=128, block_k=128,
                                        mxu_dtype=jnp.float32)
    jax.block_until_ready(of32)
    assert of32.shape == (Bf, Lf, Df)
    assert jnp.allclose(of32, rf, atol=2e-3, rtol=2e-3), "flash SDPA (f32) mismatch vs reference"

    # bf16 fast path actually used by the module.
    obf = scaled_dot_product_attention(Qf, Kf, Vf, sc, block_q=128, block_k=128)
    jax.block_until_ready(obf)
    assert jnp.allclose(obf, rf, atol=5e-2, rtol=5e-2), "flash SDPA (bf16) mismatch vs reference"

    # --- scale=None path (standalone attention default signature), exact-math mode -----
    Qs, Ks, Vs = Qf[:, :8, :32] * 0.25, Kf[:, :8, :32] * 0.25, Vf[:, :8, :32]
    o0 = scaled_dot_product_attention(Qs, Ks, Vs, mxu_dtype=jnp.float32)
    jax.block_until_ready(o0)
    r0 = _sdpa_reference(Qs, Ks, Vs)
    assert jnp.allclose(o0, r0, atol=5e-3, rtol=5e-3), "SDPA (no scale) mismatch vs reference"

    print("KERNEL_OK")
</pallas_src>

<mosaic_0001>
module attributes {stable_mosaic.version = 11 : i64} {
  func.func @_small_sdpa_kernel(%arg0: i32, %arg1: memref<8x8x8xf32, #tpu.memory_space<vmem>>, %arg2: memref<8x8x8xf32, #tpu.memory_space<vmem>>, %arg3: memref<8x8x8xf32, #tpu.memory_space<vmem>>, %arg4: memref<8x8x8xf32, #tpu.memory_space<vmem>>) attributes {dimension_semantics = [#tpu.dimension_semantics<arbitrary>], iteration_bounds = array<i64: 1>, scalar_prefetch = 0 : i64, scratch_operands = 0 : i64, tpu.core_type = #tpu.core_type<tc>, window_params = [{pipeline_mode = #tpu.pipeline_mode<synchronous>, transform_indices = @transform_0, window_bounds = array<i64: 8, 8, 8>}, {pipeline_mode = #tpu.pipeline_mode<synchronous>, transform_indices = @transform_1, window_bounds = array<i64: 8, 8, 8>}, {pipeline_mode = #tpu.pipeline_mode<synchronous>, transform_indices = @transform_2, window_bounds = array<i64: 8, 8, 8>}, {pipeline_mode = #tpu.pipeline_mode<synchronous>, transform_indices = @transform_3, window_bounds = array<i64: 8, 8, 8>}]} {
    %c0 = arith.constant 0 : index
    %c0_0 = arith.constant 0 : index
    %c0_1 = arith.constant 0 : index
    %0 = vector.load %arg1[%c0, %c0_0, %c0_1] : memref<8x8x8xf32, #tpu.memory_space<vmem>>, vector<8x8x8xf32>
    %cst = arith.constant 0.353553385 : f32
    %1 = vector.broadcast %cst : f32 to vector<8x8x8xf32>
    %2 = arith.mulf %0, %1 : vector<8x8x8xf32>
    %3 = arith.truncf %2 : vector<8x8x8xf32> to vector<8x8x8xbf16>
    %c0_2 = arith.constant 0 : index
    %c0_3 = arith.constant 0 : index
    %c0_4 = arith.constant 0 : index
    %4 = vector.load %arg2[%c0_2, %c0_3, %c0_4] : memref<8x8x8xf32, #tpu.memory_space<vmem>>, vector<8x8x8xf32>
    %5 = arith.truncf %4 : vector<8x8x8xf32> to vector<8x8x8xbf16>
    "tpu.trace_start"() <{level = 10 : i32, message = "bqd,bkd->bqk"}> : () -> ()
    %cst_5 = arith.constant dense<0.000000e+00> : vector<8x8x8xf32>
    %6 = tpu.matmul %3, %5, %cst_5 {dimension_numbers = #tpu.dot_dimension_numbers<[2], [2], [1], [1], [0, 0, 0, 1, 1, 1], [0], [0]>} : vector<8x8x8xbf16>, vector<8x8x8xbf16>, vector<8x8x8xf32> -> vector<8x8x8xf32>
    "tpu.trace_stop"() : () -> ()
    %cst_6 = arith.constant dense<0xFF800000> : vector<8x8xf32>
    %7 = vector.multi_reduction <maximumf>, %6, %cst_6 [2] : vector<8x8x8xf32> to vector<8x8xf32>
    %8 = vector.shape_cast %7 : vector<8x8xf32> to vector<8x8x1xf32>
    %9 = vector.broadcast %8 : vector<8x8x1xf32> to vector<8x8x8xf32>
    %10 = arith.subf %6, %9 : vector<8x8x8xf32>
    %11 = math.exp %10 : vector<8x8x8xf32>
    %cst_7 = arith.constant dense<0.000000e+00> : vector<8x8xf32>
    %12 = vector.multi_reduction <add>, %11, %cst_7 [2] : vector<8x8x8xf32> to vector<8x8xf32>
    %13 = vector.shape_cast %12 : vector<8x8xf32> to vector<8x8x1xf32>
    %cst_8 = arith.constant 1.000000e+00 : f32
    %14 = vector.broadcast %cst_8 : f32 to vector<8x8x1xf32>
    %15 = arith.divf %14, %13 : vector<8x8x1xf32>
    %16 = arith.truncf %11 : vector<8x8x8xf32> to vector<8x8x8xbf16>
    %c0_9 = arith.constant 0 : index
    %c0_10 = arith.constant 0 : index
    %c0_11 = arith.constant 0 : index
    %17 = vector.load %arg3[%c0_9, %c0_10, %c0_11] : memref<8x8x8xf32, #tpu.memory_space<vmem>>, vector<8x8x8xf32>
    %18 = arith.truncf %17 : vector<8x8x8xf32> to vector<8x8x8xbf16>
    "tpu.trace_start"() <{level = 10 : i32, message = "bqk,bkd->bqd"}> : () -> ()
    %cst_12 = arith.constant dense<0.000000e+00> : vector<8x8x8xf32>
    %19 = tpu.matmul %16, %18, %cst_12 {dimension_numbers = #tpu.dot_dimension_numbers<[2], [1], [1], [2], [0, 0, 0, 1, 1, 2], [0], [0]>} : vector<8x8x8xbf16>, vector<8x8x8xbf16>, vector<8x8x8xf32> -> vector<8x8x8xf32>
    "tpu.trace_stop"() : () -> ()
    %20 = vector.broadcast %15 : vector<8x8x1xf32> to vector<8x8x8xf32>
    %21 = arith.mulf %19, %20 : vector<8x8x8xf32>
    %c0_13 = arith.constant 0 : index
    %c0_14 = arith.constant 0 : index
    %c0_15 = arith.constant 0 : index
    %22 = vector.load %arg4[%c0_13, %c0_14, %c0_15] : memref<8x8x8xf32, #tpu.memory_space<vmem>>, vector<8x8x8xf32>
    tpu.vector_store %arg4[%c0_13, %c0_14, %c0_15], %21 {strides = array<i32>} : memref<8x8x8xf32, #tpu.memory_space<vmem>>, vector<8x8x8xf32>,
    return
  }
  func.func @transform_0(%arg0: i32) -> (i32, i32, i32) {
    %c0_i32 = arith.constant 0 : i32
    %c0_i32_0 = arith.constant 0 : i32
    %c0_i32_1 = arith.constant 0 : i32
    %c0_i32_2 = arith.constant 0 : i32
    return %c0_i32, %c0_i32_0, %c0_i32_1 : i32, i32, i32
  }
  func.func @transform_1(%arg0: i32) -> (i32, i32, i32) {
    %c0_i32 = arith.constant 0 : i32
    %c0_i32_0 = arith.constant 0 : i32
    %c0_i32_1 = arith.constant 0 : i32
    %c0_i32_2 = arith.constant 0 : i32
    return %c0_i32, %c0_i32_0, %c0_i32_1 : i32, i32, i32
  }
  func.func @transform_2(%arg0: i32) -> (i32, i32, i32) {
    %c0_i32 = arith.constant 0 : i32
    %c0_i32_0 = arith.constant 0 : i32
    %c0_i32_1 = arith.constant 0 : i32
    %c0_i32_2 = arith.constant 0 : i32
    return %c0_i32, %c0_i32_0, %c0_i32_1 : i32, i32, i32
  }
  func.func @transform_3(%arg0: i32) -> (i32, i32, i32) {
    %c0_i32 = arith.constant 0 : i32
    %c0_i32_0 = arith.constant 0 : i32
    %c0_i32_1 = arith.constant 0 : i32
    %c0_i32_2 = arith.constant 0 : i32
    return %c0_i32, %c0_i32_0, %c0_i32_1 : i32, i32, i32
  }
}

</mosaic_0001>

<bundles_post_ra>
// kernel: tpu_custom_call.1
= control target key start
LH: loop header
LB: loop body
LE: loop exit
PB: predicated region body
PF: predicated region fallthrough
CT: control target
= control target key end

     0   :  { %8 = vsyncpa [#allocation3], 0  ;;  %s1482_s0 = inlined_call_operand.hbm [shape: f32[8,8,8], index: 0, kind: input, shape index: {}]   ;;  %s1483_s1 = inlined_call_operand.hbm [shape: f32[8,8,8], index: 1, kind: input, shape index: {}]   ;;  %s1484_s2 = inlined_call_operand.hbm [shape: f32[8,8,8], index: 2, kind: input, shape index: {}]   ;;  %s1485_s3 = inlined_call_operand.hbm [shape: f32[8,8,8], index: 3, kind: output, shape index: {}]  }
   0x1   :  { %9 = vsyncpa [#allocation6], 0 }
   0x2   :  { %10 = vsyncpa [#allocation4], 0  ;;  %s1259_s12 = smov [#allocation5]   ;;  %s1260_s14 = smov [#allocation2]  }
   0x3   :  { %s28_s13 = sshll.u32 %s1259_s12, 4  ;;  %s16_s15 = sshll.u32 %s1260_s14, 4  ;;  %s29_s13 = int_to_ptr.vmem [resolvable:$true] %s28_s13  ;;  %s1287_s15 = int_to_ptr.vmem [resolvable:$true] %s16_s15 }
   0x4   :  { %s1165_s18 = scalar_lea.hbm %s1483_s1, 1024 }
   0x5   :  { %p1166_p0 = scmp.ne.s32.totalorder %s1483_s1, %s1165_s18  ;;  %p1169_p1 = scmp.lt.u32.totalorder %s1165_s18, %s1483_s1 }
   0x7   :  { %p1171_p2 = pnand %p1169_p1, %p1166_p0 }
   0x9   :  { %1174 = shalt.err (!%p1171_p2)
}
   0xa   :  { %s1175_s23 = scalar_lea.vmem %s29_s13, 1024  ;;  %p1180_p4 = scmp.lt.s32.totalorder %s29_s13, %s29_s13 }
   0xb   :  { %p1176_p3 = scmp.ne.s32.totalorder %s29_s13, %s1175_s23  ;;  %p1181_p5 = scmp.lt.s32.totalorder %s1175_s23, %s1175_s23 }
   0xd   :  { %p1182_p6 = por %p1181_p5, %p1180_p4 }
   0xf   :  { %p1183_p7 = pnand %p1182_p6, %p1176_p3 }
  0x11   :  { %1186 = shalt.err (!%p1183_p7)
}
  0x12   :  { %s1261_s24 = smov 128   ;;  %s1262_s25 = smov 8  }
  0x13   :  { %34 = dma.hbm_to_vmem [thread:$0]  %s1483_s1, 1024, %s29_s13, [#allocation6], %s1261_s24, %s1261_s24, %s1262_s25  }
  0x14   :  { %s1187_s30 = scalar_lea.hbm %s1482_s0, 1024 }
  0x15   :  { %p1188_p8 = scmp.ne.s32.totalorder %s1482_s0, %s1187_s30  ;;  %p1191_p9 = scmp.lt.u32.totalorder %s1187_s30, %s1482_s0 }
  0x17   :  { %p1193_p10 = pnand %p1191_p9, %p1188_p8 }
  0x19   :  { %1196 = shalt.err (!%p1193_p10)
}
  0x1a   :  { %s1197_s8 = scalar_lea.vmem %s1287_s15, 1024  ;;  %p1202_p12 = scmp.lt.s32.totalorder %s1287_s15, %s1287_s15 }
  0x1b   :  { %p1198_p11 = scmp.ne.s32.totalorder %s1287_s15, %s1197_s8  ;;  %p1203_p13 = scmp.lt.s32.totalorder %s1197_s8, %s1197_s8 }
  0x1d   :  { %p1204_p0 = por %p1203_p13, %p1202_p12 }
  0x1f   :  { %p1205_p1 = pnand %p1204_p0, %p1198_p11 }
  0x21   :  { %1208 = shalt.err (!%p1205_p1)
}
  0x22   :  { %22 = dma.hbm_to_vmem [thread:$0]  %s1482_s0, 1024, %s1287_s15, [#allocation3], %s1261_s24, %s1261_s24, %s1262_s25  }
  0x23   :  { %s1263_s10 = smov [#allocation7]   ;;  %s1209_s14 = scalar_lea.hbm %s1484_s2, 1024 }
  0x24   :  { %s40_s11 = sshll.u32 %s1263_s10, 4  ;;  %p1210_p2 = scmp.ne.s32.totalorder %s1484_s2, %s1209_s14  ;;  %s41_s11 = int_to_ptr.vmem [resolvable:$true] %s40_s11 }
  0x25   :  { %p1213_p3 = scmp.lt.u32.totalorder %s1209_s14, %s1484_s2 }
  0x27   :  { %p1215_p4 = pnand %p1213_p3, %p1210_p2 }
  0x29   :  { %1218 = shalt.err (!%p1215_p4)
}
  0x2a   :  { %s1219_s20 = scalar_lea.vmem %s41_s11, 1024  ;;  %p1224_p6 = scmp.lt.s32.totalorder %s41_s11, %s41_s11 }
  0x2b   :  { %p1220_p5 = scmp.ne.s32.totalorder %s41_s11, %s1219_s20  ;;  %p1225_p7 = scmp.lt.s32.totalorder %s1219_s20, %s1219_s20 }
  0x2d   :  { %p1226_p8 = por %p1225_p7, %p1224_p6 }
  0x2f   :  { %p1227_p9 = pnand %p1226_p8, %p1220_p5 }
  0x31   :  { %1230 = shalt.err (!%p1227_p9)
}
  0x32   :  { %46 = dma.hbm_to_vmem [thread:$0]  %s1484_s2, 1024, %s41_s11, [#allocation6], %s1261_s24, %s1261_s24, %s1262_s25  }
  0x33   :  { %1253 = dma.done.wait [#allocation3], 1024  }
  0x34   :  { %1254 = vsyncadd [#allocation3], 4294966272 }
  0x35   :  { %1255 = dma.done.wait [#allocation6], 2048  }
  0x36   :  { %1256 = vsyncadd [#allocation6], 4294965248  ;;  %v1264_v0 = vmov 0.0   ;;  %vm1265_vm0 = vmmov 0   ;;  %v81_v1 = vld [vmem:[#allocation5] sm:$0xff]  ;;  %vm97_vm1 = vcmask 64512  }
  0x37   :  { %1029 = vmatprep.subr.bf16.mxu0 %v1264_v0  ;;  %1035 = vmatprep.subr.bf16.mxu1 %v1264_v0  ;;  %v82_v2 = vld [vmem:[#allocation5 + $0x8] sm:$0xff]  ;;  %v57_v3 = vld [vmem:[#allocation2] sm:$0xff]  ;;  %v89_v4 = vpack.c.bf16 %v81_v1, %v81_v1  ;;  %v83_v7 = vld [vmem:[#allocation5 + $0x10] sm:$0xff]  ;;  %vm581_vm2 = vcmask 1043456   ;;  %s1266_s2 = smov [#allocation8]  }
  0x38   :  { %1031 = vmatprep.mubr.msk.bf16.mxu0 %vm1265_vm0, %v1264_v0  ;;  %1037 = vmatprep.mubr.msk.bf16.mxu1 %vm1265_vm0, %v1264_v0  ;;  %v90_v5 = vpack.c.bf16 %v82_v2, %v82_v2  ;;  %v58_v6 = vld [vmem:[#allocation2 + $0x8] sm:$0xff]  ;;  %v84_v8 = vld [vmem:[#allocation5 + $0x18] sm:$0xff]  ;;  %v65_v11 = vmul.f32 0.35355338, %v57_v3  ;;  %v91_v13 = vpack.c.bf16 %v83_v7, %v83_v7  ;;  %v59_v17 = vld [vmem:[#allocation2 + $0x10] sm:$0xff]  ;;  %s968_s21 = sshll.u32 %s1266_s2, 4  ;;  %s969_s21 = int_to_ptr.vmem [resolvable:$true] %s968_s21 }
  0x39   :  { %v102_v9 = vsel %vm97_vm1, %v89_v4, 0  ;;  %v66_v12 = vmul.f32 0.35355338, %v58_v6  ;;  %v92_v14 = vpack.c.bf16 %v84_v8, %v84_v8  ;;  %v60_v18 = vld [vmem:[#allocation2 + $0x18] sm:$0xff]  ;;  %v85_v21 = vld [vmem:[#allocation5 + $0x20] sm:$0xff]  ;;  %v86_v22 = vld [vmem:[#allocation5 + $0x28] sm:$0xff]  ;;  %p1236_p11 = scmp.lt.s32.totalorder %s969_s21, %s969_s21 }
  0x3a   :  { %v148_v10 = vsel %vm97_vm1, %v90_v5, 0  ;;  %1030 = vmatpush3.bf16.xpose.msra.mxu0 %v102_v9  ;;  %v73_v15 = vpack.c.bf16 %v65_v11, %v65_v11  ;;  %v194_v19 = vsel %vm97_vm1, %v91_v13, 0  ;;  %v67_v23 = vmul.f32 0.35355338, %v59_v17  ;;  %v61_v29 = vld [vmem:[#allocation2 + $0x20] sm:$0xff]  ;;  %v62_v30 = vld [vmem:[#allocation2 + $0x28] sm:$0xff] }
  0x3b   :  { %1036 = vmatpush3.bf16.xpose.msra.mxu1 %v148_v10  ;;  %1041 = vmatprep.subr.bf16.mxu0 %v1264_v0  ;;  %v74_v16 = vpack.c.bf16 %v66_v12, %v66_v12  ;;  %v240_v20 = vsel %vm97_vm1, %v92_v14, 0  ;;  %v68_v24 = vmul.f32 0.35355338, %v60_v18  ;;  %v93_v25 = vpack.c.bf16 %v85_v21, %v85_v21  ;;  %v87_v33 = vld [vmem:[#allocation5 + $0x30] sm:$0xff]  ;;  %v88_v34 = vld [vmem:[#allocation5 + $0x38] sm:$0xff]  ;;  %s1231_s22 = scalar_lea.vmem %s969_s21, 1024 }
  0x3c   :  { %1047 = vmatprep.subr.bf16.mxu1 %v1264_v0  ;;  %v94_v26 = vpack.c.bf16 %v86_v22, %v86_v22  ;;  %v75_v27 = vpack.c.bf16 %v67_v23, %v67_v23  ;;  %v69_v35 = vmul.f32 0.35355338, %v61_v29  ;;  %v70_v36 = vmul.f32 0.35355338, %v62_v30  ;;  %v63_v41 = vld [vmem:[#allocation2 + $0x30] sm:$0xff]  ;;  %v64_v42 = vld [vmem:[#allocation2 + $0x38] sm:$0xff]  ;;  %p1232_p10 = scmp.ne.s32.totalorder %s969_s21, %s1231_s22  ;;  %p1237_p12 = scmp.lt.s32.totalorder %s1231_s22, %s1231_s22 }
  0x3d   :  { %v76_v28 = vpack.c.bf16 %v68_v24, %v68_v24  ;;  %v286_v31 = vsel %vm97_vm1, %v93_v25, 0  ;;  %v95_v37 = vpack.c.bf16 %v87_v33, %v87_v33  ;;  %v96_v38 = vpack.c.bf16 %v88_v34, %v88_v34  ;;  %v562_v24 = vld [vmem:[#allocation7] sm:$0xff]  ;;  %v563_v29 = vld [vmem:[#allocation7 + $0x8] sm:$0xff] }
  0x3e   :  { %v332_v32 = vsel %vm97_vm1, %v94_v26, 0  ;;  %v77_v39 = vpack.c.bf16 %v69_v35, %v69_v35  ;;  %v78_v40 = vpack.c.bf16 %v70_v36, %v70_v36  ;;  %v71_v45 = vmul.f32 0.35355338, %v63_v41  ;;  %p1238_p13 = por %p1237_p12, %p1236_p11 }
  0x3f   :  { %v378_v43 = vsel %vm97_vm1, %v95_v37, 0  ;;  %v424_v44 = vsel %vm97_vm1, %v96_v38, 0  ;;  %v72_v46 = vmul.f32 0.35355338, %v64_v42  ;;  %v571_v30 = vpack.c.bf16 %v563_v29, %v563_v29 }
  0x40   :  { %v79_v47 = vpack.c.bf16 %v71_v45, %v71_v45  ;;  %v565_v45 = vld [vmem:[#allocation7 + $0x18] sm:$0xff]  ;;  %p1239_p0 = pnand %p1238_p13, %p1232_p10 }
  0x41   :  { %1032 = vmatmul.mubr.msk.bf16.vlgmr.msra.gmra.mrb[0].mxu0 %vm97_vm1, %v73_v15  ;;  %v80_v48 = vpack.c.bf16 %v72_v46, %v72_v46 }
  0x42   :  { %1038 = vmatmul.mubr.msk.bf16.vlgmr.msra.gmra.mrb[0].mxu1 %vm97_vm1, %v74_v16  ;;  %1042 = vmatpush3.bf16.xpose.msra.mxu0 %v194_v19 }
  0x43   :  { %1048 = vmatpush3.bf16.xpose.msra.mxu1 %v240_v20  ;;  %1043 = vmatprep.mubr.msk.bf16.mxu0 %vm1265_vm0, %v1264_v0 }
  0x44   :  { %1049 = vmatprep.mubr.msk.bf16.mxu1 %vm1265_vm0, %v1264_v0  ;;  %1053 = vmatprep.subr.bf16.mxu0 %v1264_v0 }
  0x45   :  { %1059 = vmatprep.subr.bf16.mxu1 %v1264_v0 }
  0x49   :  { %1044 = vmatmul.mubr.msk.bf16.vlgmr.msra.gmra.mrb[4].mxu0 %vm97_vm1, %v75_v27  ;;  %v570_v27 = vpack.c.bf16 %v562_v24, %v562_v24 }
  0x4a   :  { %1050 = vmatmul.mubr.msk.bf16.vlgmr.msra.gmra.mrb[4].mxu1 %vm97_vm1, %v76_v28  ;;  %1054 = vmatpush3.bf16.xpose.msra.mxu0 %v286_v31  ;;  %v629_v31 = vsel %vm581_vm2, %v571_v30, 0 }
  0x4b   :  { %1060 = vmatpush3.bf16.xpose.msra.mxu1 %v332_v32  ;;  %1055 = vmatprep.mubr.msk.bf16.mxu0 %vm1265_vm0, %v1264_v0  ;;  %v583_v28 = vsel %vm581_vm2, %v570_v27, 0 }
  0x4c   :  { %1061 = vmatprep.mubr.msk.bf16.mxu1 %vm1265_vm0, %v1264_v0  ;;  %1065 = vmatprep.subr.bf16.mxu0 %v1264_v0 }
  0x4d   :  { %1071 = vmatprep.subr.bf16.mxu1 %v1264_v0 }
  0x51   :  { %1056 = vmatmul.mubr.msk.bf16.vlgmr.msra.gmra.mrb[8].mxu0 %vm97_vm1, %v77_v39 }
  0x52   :  { %1062 = vmatmul.mubr.msk.bf16.vlgmr.msra.gmra.mrb[8].mxu1 %vm97_vm1, %v78_v40  ;;  %1066 = vmatpush3.bf16.xpose.msra.mxu0 %v378_v43  ;;  %v564_v40 = vld [vmem:[#allocation7 + $0x10] sm:$0xff] }
  0x53   :  { %1072 = vmatpush3.bf16.xpose.msra.mxu1 %v424_v44  ;;  %1067 = vmatprep.mubr.msk.bf16.mxu0 %vm1265_vm0, %v1264_v0  ;;  %v572_v43 = vpack.c.bf16 %v564_v40, %v564_v40 }
  0x54   :  { %1073 = vmatprep.mubr.msk.bf16.mxu1 %vm1265_vm0, %v1264_v0  ;;  %1077 = vmatprep.subr.bf16.mxu0 %v1264_v0 }
  0x55   :  { %1083 = vmatprep.subr.bf16.mxu1 %v1264_v0 }
  0x59   :  { %1068 = vmatmul.mubr.msk.bf16.vlgmr.msra.gmra.mrb[12].mxu0 %vm97_vm1, %v79_v47 }
  0x5a   :  { %1074 = vmatmul.mubr.msk.bf16.vlgmr.msra.gmra.mrb[12].mxu1 %vm97_vm1, %v80_v48  ;;  %1079 = vmatprep.mubr.msk.bf16.mxu0 %vm1265_vm0, %v1264_v0 }
  0x5b   :  { %1085 = vmatprep.mubr.msk.bf16.mxu1 %vm1265_vm0, %v1264_v0  ;;  %1078 = vmatpush3.bf16.msra.mxu0 %v583_v28 }
  0x5c   :  { %1089 = vmatprep.subr.bf16.mxu0 %v1264_v0  ;;  %1084 = vmatpush3.bf16.msra.mxu1 %v629_v31 }
  0x5d   :  { %1095 = vmatprep.subr.bf16.mxu1 %v1264_v0 }
 0x114   :  { %v138_v49 = vpop.f32.mrb[0].mxu0 }
 0x115   :  { %v1385_v50 = vpop.f32.mrb[0].mxu1  ;;  %v1033_v51 = vpop.f32.mrb[1].mxu0  ;;  %v466_v52 = vsel %vm97_vm1, %v138_v49, -inf }
 0x116   :  { %v1039_v53 = vpop.f32.mrb[1].mxu1  ;;  %467 = vmax.xlane.f32.xlu0 %v466_v52  ;;  %v141_v54 = vpop.f32.mrb[2].mxu0  ;;  %v469_v58 = vsel %vm97_vm1, %v1385_v50, -inf }
 0x117   :  { %v187_v55 = vpop.f32.mrb[2].mxu1  ;;  %v1034_v56 = vpop.f32.mrb[3].mxu0  ;;  %v573_v53 = vpack.c.bf16 %v565_v45, %v565_v45 }
 0x118   :  { %v1040_v57 = vpop.f32.mrb[3].mxu1  ;;  %v566_v56 = vld [vmem:[#allocation7 + $0x20] sm:$0xff] }
 0x11a   :  { %470 = vmax.xlane.f32.xlu0 %v469_v58 }
 0x11c   :  { %v230_v59 = vpop.f32.mrb[4].mxu0 }
 0x11d   :  { %v1390_v60 = vpop.f32.mrb[4].mxu1  ;;  %v1045_v61 = vpop.f32.mrb[5].mxu0  ;;  %v472_v62 = vsel %vm97_vm1, %v230_v59, -inf }
 0x11e   :  { %v1051_v63 = vpop.f32.mrb[5].mxu1  ;;  %473 = vmax.xlane.f32.xlu1 %v472_v62  ;;  %v233_v1 = vpop.f32.mrb[6].mxu0  ;;  %v475_v5 = vsel %vm97_vm1, %v1390_v60, -inf  ;;  %v721_v62 = vsel %vm581_vm2, %v573_v53, 0 }
 0x11f   :  { %v279_v2 = vpop.f32.mrb[6].mxu1  ;;  %v1046_v3 = vpop.f32.mrb[7].mxu0  ;;  %v574_v63 = vpack.c.bf16 %v566_v56, %v566_v56  ;;  %v567_v1 = vld [vmem:[#allocation7 + $0x28] sm:$0xff] }
 0x120   :  { %v1052_v4 = vpop.f32.mrb[7].mxu1 }
 0x122   :  { %476 = vmax.xlane.f32.xlu1 %v475_v5 }
 0x124   :  { %v1395_v6 = vpop.f32.mrb[8].mxu0 }
 0x125   :  { %v1397_v7 = vpop.f32.mrb[8].mxu1  ;;  %v478_v9 = vsel %vm97_vm1, %v1395_v6, -inf  ;;  %v1057_v10 = vpop.f32.mrb[9].mxu0 }
 0x126   :  { %v481_v8 = vsel %vm97_vm1, %v1397_v7, -inf  ;;  %v1063_v11 = vpop.f32.mrb[9].mxu1  ;;  %479 = vmax.xlane.f32.xlu0 %v478_v9  ;;  %v325_v12 = vpop.f32.mrb[10].mxu0 }
 0x127   :  { %482 = vmax.xlane.f32.xlu1 %v481_v8  ;;  %v371_v13 = vpop.f32.mrb[10].mxu1  ;;  %v1058_v14 = vpop.f32.mrb[11].mxu0  ;;  %v575_v8 = vpack.c.bf16 %v567_v1, %v567_v1  ;;  %v568_v11 = vld [vmem:[#allocation7 + $0x30] sm:$0xff] }
 0x128   :  { %v1064_v15 = vpop.f32.mrb[11].mxu1 }
 0x12c   :  { %v1403_v16 = vpop.f32.mrb[12].mxu0 }
 0x12d   :  { %v1405_v17 = vpop.f32.mrb[12].mxu1  ;;  %v484_v19 = vsel %vm97_vm1, %v1403_v16, -inf  ;;  %v1069_v20 = vpop.f32.mrb[13].mxu0 }
 0x12e   :  { %v487_v18 = vsel %vm97_vm1, %v1405_v17, -inf  ;;  %v1075_v21 = vpop.f32.mrb[13].mxu1  ;;  %485 = vmax.xlane.f32.xlu0 %v484_v19  ;;  %v417_v22 = vpop.f32.mrb[14].mxu0  ;;  %v813_v19 = vsel %vm581_vm2, %v575_v8, 0 }
 0x12f   :  { %488 = vmax.xlane.f32.xlu1 %v487_v18  ;;  %v463_v23 = vpop.f32.mrb[14].mxu1  ;;  %v1070_v25 = vpop.f32.mrb[15].mxu0 }
 0x130   :  { %v1076_v26 = vpop.f32.mrb[15].mxu1 }
 0x1a3   :  { %v468_v32 = vpop.xlane.xlu0 %467 }
 0x1a4   :  { %v490_v33 = vsub.f32 %v138_v49, %v468_v32 }
 0x1a6   :  { %v498_v34 = vmul.f32 1.442695, %v490_v33 }
 0x1a7   :  { %v471_v35 = vpop.xlane.xlu0 %470 }
 0x1a8   :  { %1133 = vpow2.f32 %v498_v34  ;;  %v491_v36 = vsub.f32 %v1385_v50, %v471_v35  ;;  %v675_v50 = vsel %vm581_vm2, %v572_v43, 0 }
 0x1aa   :  { %v500_v37 = vmul.f32 1.442695, %v491_v36 }
 0x1ab   :  { %v474_v38 = vpop.xlane.xlu1 %473 }
 0x1ac   :  { %1135 = vpow2.f32 %v500_v37  ;;  %v492_v39 = vsub.f32 %v230_v59, %v474_v38 }
 0x1ae   :  { %v502_v41 = vmul.f32 1.442695, %v492_v39 }
 0x1af   :  { %v477_v42 = vpop.xlane.xlu1 %476 }
 0x1b0   :  { %1137 = vpow2.f32 %v502_v41  ;;  %v493_v44 = vsub.f32 %v1390_v60, %v477_v42 }
 0x1b2   :  { %v1134_v46 = vpop.eup %1133  ;;  %v504_v47 = vmul.f32 1.442695, %v493_v44 }
 0x1b3   :  { %v480_v49 = vpop.xlane.xlu0 %479  ;;  %v514_v51 = vsel %vm97_vm1, %v1134_v46, 0.0  ;;  %v554_v52 = vpack.c.bf16 %v1134_v46, %v1134_v46 }
 0x1b4   :  { %v483_v48 = vpop.xlane.xlu1 %482  ;;  %1139 = vpow2.f32 %v504_v47  ;;  %v494_v55 = vsub.f32 %v1395_v6, %v480_v49  ;;  %515 = vadd.xlane.f32.xlu0 %v514_v51 }
 0x1b5   :  { %v495_v54 = vsub.f32 %v1397_v7, %v483_v48  ;;  %1080 = vmatmul.mubr.msk.bf16.vlgmr.msra.gmra.mrb[16].mxu0 %vm97_vm1, %v554_v52  ;;  %v767_v7 = vsel %vm581_vm2, %v574_v63, 0 }
 0x1b6   :  { %v1136_v57 = vpop.eup %1135  ;;  %v506_v59 = vmul.f32 1.442695, %v494_v55  ;;  %1090 = vmatpush3.bf16.msra.mxu0 %v675_v50  ;;  %1091 = vmatprep.mubr.msk.bf16.mxu0 %vm1265_vm0, %v1264_v0 }
 0x1b7   :  { %v508_v58 = vmul.f32 1.442695, %v495_v54  ;;  %v517_v60 = vsel %vm97_vm1, %v1136_v57, 0.0  ;;  %v555_v61 = vpack.c.bf16 %v1136_v57, %v1136_v57  ;;  %1101 = vmatprep.subr.bf16.mxu0 %v1264_v0 }
 0x1b8   :  { %518 = vadd.xlane.f32.xlu1 %v517_v60 }
 0x1b9   :  { %1141 = vpow2.f32 %v508_v58  ;;  %1086 = vmatmul.mubr.msk.bf16.vlgmr.msra.gmra.mrb[16].mxu1 %vm97_vm1, %v555_v61 }
 0x1ba   :  { %1143 = vpow2.f32 %v506_v59  ;;  %v1138_v2 = vpop.eup %1137  ;;  %1096 = vmatpush3.bf16.msra.mxu1 %v721_v62  ;;  %1097 = vmatprep.mubr.msk.bf16.mxu1 %vm1265_vm0, %v1264_v0 }
 0x1bb   :  { %v486_v4 = vpop.xlane.xlu0 %485  ;;  %v520_v5 = vsel %vm97_vm1, %v1138_v2, 0.0  ;;  %v556_v6 = vpack.c.bf16 %v1138_v2, %v1138_v2  ;;  %1107 = vmatprep.subr.bf16.mxu1 %v1264_v0 }
 0x1bc   :  { %v489_v3 = vpop.xlane.xlu1 %488  ;;  %v496_v10 = vsub.f32 %v1403_v16, %v486_v4  ;;  %521 = vadd.xlane.f32.xlu0 %v520_v5  ;;  %v576_v16 = vpack.c.bf16 %v568_v11, %v568_v11 }
 0x1bd   :  { %v497_v9 = vsub.f32 %v1405_v17, %v489_v3  ;;  %1092 = vmatmul.mubr.msk.bf16.vlgmr.msra.gmra.mrb[20].mxu0 %vm97_vm1, %v556_v6  ;;  %v569_v17 = vld [vmem:[#allocation7 + $0x38] sm:$0xff] }
 0x1be   :  { %v1140_v12 = vpop.eup %1139  ;;  %v510_v14 = vmul.f32 1.442695, %v496_v10  ;;  %1102 = vmatpush3.bf16.msra.mxu0 %v767_v7  ;;  %1103 = vmatprep.mubr.msk.bf16.mxu0 %vm1265_vm0, %v1264_v0  ;;  %v577_v23 = vpack.c.bf16 %v569_v17, %v569_v17  ;;  %v859_v26 = vsel %vm581_vm2, %v576_v16, 0 }
 0x1bf   :  { %v512_v13 = vmul.f32 1.442695, %v497_v9  ;;  %v523_v15 = vsel %vm97_vm1, %v1140_v12, 0.0  ;;  %v557_v18 = vpack.c.bf16 %v1140_v12, %v1140_v12  ;;  %1113 = vmatprep.subr.bf16.mxu0 %v1264_v0 }
 0x1c0   :  { %524 = vadd.xlane.f32.xlu1 %v523_v15  ;;  %v905_v28 = vsel %vm581_vm2, %v577_v23, 0 }
 0x1c1   :  { %1145 = vpow2.f32 %v512_v13  ;;  %1098 = vmatmul.mubr.msk.bf16.vlgmr.msra.gmra.mrb[20].mxu1 %vm97_vm1, %v557_v18 }
 0x1c2   :  { %1147 = vpow2.f32 %v510_v14  ;;  %1108 = vmatpush3.bf16.msra.mxu1 %v813_v19  ;;  %1109 = vmatprep.mubr.msk.bf16.mxu1 %vm1265_vm0, %v1264_v0 }
 0x1c3   :  { %v1142_v20 = vpop.eup %1141  ;;  %1119 = vmatprep.subr.bf16.mxu1 %v1264_v0 }
 0x1c4   :  { %v1144_v21 = vpop.eup %1143  ;;  %v529_v22 = vsel %vm97_vm1, %v1142_v20, 0.0  ;;  %v559_v27 = vpack.c.bf16 %v1142_v20, %v1142_v20 }
 0x1c5   :  { %530 = vadd.xlane.f32.xlu1 %v529_v22  ;;  %v526_v24 = vsel %vm97_vm1, %v1144_v21, 0.0  ;;  %v558_v25 = vpack.c.bf16 %v1144_v21, %v1144_v21 }
 0x1c6   :  { %527 = vadd.xlane.f32.xlu0 %v526_v24 }
 0x1c7   :  { %1104 = vmatmul.mubr.msk.bf16.vlgmr.msra.gmra.mrb[24].mxu0 %vm97_vm1, %v558_v25 }
 0x1c8   :  { %1114 = vmatpush3.bf16.msra.mxu0 %v859_v26  ;;  %1115 = vmatprep.mubr.msk.bf16.mxu0 %vm1265_vm0, %v1264_v0 }
 0x1c9   :  { %1110 = vmatmul.mubr.msk.bf16.vlgmr.msra.gmra.mrb[24].mxu1 %vm97_vm1, %v559_v27 }
 0x1ca   :  { %1120 = vmatpush3.bf16.msra.mxu1 %v905_v28  ;;  %1121 = vmatprep.mubr.msk.bf16.mxu1 %vm1265_vm0, %v1264_v0 }
 0x1cb   :  { %v1146_v29 = vpop.eup %1145 }
 0x1cc   :  { %v1148_v30 = vpop.eup %1147  ;;  %v535_v31 = vsel %vm97_vm1, %v1146_v29, 0.0  ;;  %v561_v34 = vpack.c.bf16 %v1146_v29, %v1146_v29 }
 0x1cd   :  { %536 = vadd.xlane.f32.xlu1 %v535_v31  ;;  %v532_v32 = vsel %vm97_vm1, %v1148_v30, 0.0  ;;  %v560_v33 = vpack.c.bf16 %v1148_v30, %v1148_v30 }
 0x1ce   :  { %533 = vadd.xlane.f32.xlu0 %v532_v32 }
 0x1cf   :  { %1116 = vmatmul.mubr.msk.bf16.vlgmr.msra.gmra.mrb[28].mxu0 %vm97_vm1, %v560_v33 }
 0x1d1   :  { %1122 = vmatmul.mubr.msk.bf16.vlgmr.msra.gmra.mrb[28].mxu1 %vm97_vm1, %v561_v34 }
 0x241   :  { %v516_v35 = vpop.xlane.xlu0 %515 }
 0x242   :  { %1149 = vrcp.f32 %v516_v35 }
 0x245   :  { %v519_v36 = vpop.xlane.xlu1 %518 }
 0x246   :  { %1151 = vrcp.f32 %v519_v36 }
 0x249   :  { %v522_v37 = vpop.xlane.xlu0 %521 }
 0x24a   :  { %1153 = vrcp.f32 %v522_v37 }
 0x24c   :  { %v1150_v38 = vpop.eup %1149 }
 0x24d   :  { %v525_v0 = vpop.xlane.xlu1 %524 }
 0x24e   :  { %1155 = vrcp.f32 %v525_v0 }
 0x250   :  { %v1152_v44 = vpop.eup %1151 }
 0x252   :  { %v531_v51 = vpop.xlane.xlu1 %530 }
 0x253   :  { %v528_v45 = vpop.xlane.xlu0 %527 }
 0x254   :  { %1157 = vrcp.f32 %v528_v45  ;;  %v1154_v50 = vpop.eup %1153 }
 0x255   :  { %1159 = vrcp.f32 %v531_v51 }
 0x258   :  { %v1156_v58 = vpop.eup %1155 }
 0x25a   :  { %v537_v1 = vpop.xlane.xlu1 %536 }
 0x25b   :  { %v534_v59 = vpop.xlane.xlu0 %533 }
 0x25c   :  { %1161 = vrcp.f32 %v534_v59 }
 0x25d   :  { %1163 = vrcp.f32 %v537_v1 }
 0x25e   :  { %v1158_v3 = vpop.eup %1157 }
 0x25f   :  { %v1160_v8 = vpop.eup %1159 }
 0x266   :  { %v1162_v15 = vpop.eup %1161 }
 0x267   :  { %v1164_v20 = vpop.eup %1163 }
 0x288   :  { %v619_v39 = vpop.f32.mrb[16].mxu0 }
 0x289   :  { %v947_v40 = vmul.f32 %v1150_v38, %v619_v39  ;;  %v1081_v41 = vpop.f32.mrb[17].mxu0 }
 0x28a   :  { %v622_v42 = vpop.f32.mrb[18].mxu0 }
 0x28b   :  { %955 = vst.msk [vmem:[#allocation8] sm:$0xff] %vm97_vm1, %v947_v40  ;;  %v1082_v43 = vpop.f32.mrb[19].mxu0 }
 0x28c   :  { %v665_v46 = vpop.f32.mrb[16].mxu1 }
 0x28d   :  { %v948_v47 = vmul.f32 %v1152_v44, %v665_v46  ;;  %v1087_v48 = vpop.f32.mrb[17].mxu1 }
 0x28e   :  { %v668_v49 = vpop.f32.mrb[18].mxu1 }
 0x28f   :  { %956 = vst.msk [vmem:[#allocation8 + $0x8] sm:$0xff] %vm97_vm1, %v948_v47  ;;  %v1088_v52 = vpop.f32.mrb[19].mxu1 }
 0x290   :  { %v711_v53 = vpop.f32.mrb[20].mxu0 }
 0x291   :  { %v949_v54 = vmul.f32 %v1154_v50, %v711_v53  ;;  %v1093_v55 = vpop.f32.mrb[21].mxu0 }
 0x292   :  { %v714_v56 = vpop.f32.mrb[22].mxu0 }
 0x293   :  { %957 = vst.msk [vmem:[#allocation8 + $0x10] sm:$0xff] %vm97_vm1, %v949_v54  ;;  %v1094_v57 = vpop.f32.mrb[23].mxu0 }
 0x294   :  { %v757_v60 = vpop.f32.mrb[20].mxu1 }
 0x295   :  { %v950_v61 = vmul.f32 %v1156_v58, %v757_v60  ;;  %v1099_v62 = vpop.f32.mrb[21].mxu1 }
 0x296   :  { %v760_v63 = vpop.f32.mrb[22].mxu1 }
 0x297   :  { %958 = vst.msk [vmem:[#allocation8 + $0x18] sm:$0xff] %vm97_vm1, %v950_v61  ;;  %v1100_v2 = vpop.f32.mrb[23].mxu1 }
 0x29a   :  { %v803_v4 = vpop.f32.mrb[24].mxu0 }
 0x29b   :  { %v951_v5 = vmul.f32 %v1158_v3, %v803_v4  ;;  %v1105_v6 = vpop.f32.mrb[25].mxu0 }
 0x29c   :  { %v806_v7 = vpop.f32.mrb[26].mxu0  ;;  %v849_v10 = vpop.f32.mrb[24].mxu1 }
 0x29d   :  { %959 = vst.msk [vmem:[#allocation8 + $0x20] sm:$0xff] %vm97_vm1, %v951_v5  ;;  %v1106_v9 = vpop.f32.mrb[27].mxu0  ;;  %v952_v11 = vmul.f32 %v1160_v8, %v849_v10  ;;  %v1111_v12 = vpop.f32.mrb[25].mxu1 }
 0x29e   :  { %v852_v13 = vpop.f32.mrb[26].mxu1 }
 0x29f   :  { %960 = vst.msk [vmem:[#allocation8 + $0x28] sm:$0xff] %vm97_vm1, %v952_v11  ;;  %v1112_v14 = vpop.f32.mrb[27].mxu1 }
 0x2a2   :  { %v895_v18 = vpop.f32.mrb[28].mxu0 }
 0x2a3   :  { %v953_v19 = vmul.f32 %v1162_v15, %v895_v18  ;;  %v1117_v16 = vpop.f32.mrb[29].mxu0 }
 0x2a4   :  { %v898_v17 = vpop.f32.mrb[30].mxu0  ;;  %v941_v22 = vpop.f32.mrb[28].mxu1 }
 0x2a5   :  { %961 = vst.msk [vmem:[#allocation8 + $0x30] sm:$0xff] %vm97_vm1, %v953_v19  ;;  %v1118_v21 = vpop.f32.mrb[31].mxu0  ;;  %v954_v23 = vmul.f32 %v1164_v20, %v941_v22  ;;  %v1123_v24 = vpop.f32.mrb[29].mxu1 }
 0x2a6   :  { %v944_v25 = vpop.f32.mrb[30].mxu1 }
 0x2a7   :  { %962 = vst.msk [vmem:[#allocation8 + $0x38] sm:$0xff] %vm97_vm1, %v954_v23  ;;  %v1124_v26 = vpop.f32.mrb[31].mxu1 }
 0x2a8   :  { %1242 = shalt.err (!%p1239_p0)
}
 0x2a9   :  { %s1243_s27 = scalar_lea.hbm %s1485_s3, 1024 }
 0x2aa   :  { %p1244_p1 = scmp.ne.s32.totalorder %s1485_s3, %s1243_s27  ;;  %p1247_p2 = scmp.lt.u32.totalorder %s1243_s27, %s1485_s3 }
 0x2ac   :  { %p1249_p3 = pnand %p1247_p2, %p1244_p1 }
 0x2ae   :  { %1252 = shalt.err (!%p1249_p3)
}
 0x2af   :  { %974 = dma.vmem_to_hbm [thread:$0]  %s969_s21, 1024, %s1485_s3, [#allocation4], %s1261_s24, %s1261_s24, %s1262_s25  }
 0x2b0   :  { %1257 = dma.done.wait [#allocation4], 1024  }
 0x2b1   :  { %1258 = vsyncadd [#allocation4], 4294966272 }
 0x2b2   :  { %978 = vsyncpa [#allocation3], 1 }
 0x2b3   :  { %979 = vsyncpa [#allocation6], 1 }
 0x2b4   :  { %980 = vsyncpa [#allocation4], 1 }

</bundles_post_ra>
